<compile_context>
chip_gen: v6e
topology: v6e:2x2x1
jax: 0.10.0
libtpu: 0.0.40
codegen_flags: <defaults>
</compile_context>

<pallas_src>
import jax
import jax.numpy as jnp
from jax import lax
from jax.experimental import pallas as pl
from jax.experimental.pallas import tpu as pltpu


def _round_up(n, m):
    return ((n + m - 1) // m) * m


def _select_tile(batch, tb_max):
    """Pick the batch tile (multiple of 128 when tiling) and the grid length."""
    if batch <= 256:
        # Tiny batch: one block covering everything (block == full array dims).
        return batch, 1
    tb_max = max(128, (tb_max // 128) * 128)
    # At least two blocks so a v7x megacore can shard the 'parallel' axis.
    tb = min(tb_max, _round_up(pl.cdiv(batch, 2), 128))
    n = pl.cdiv(batch, tb)
    if n > 1 and n % 2 == 1:
        # Try to make the block count even for 2-TensorCore balance (v7x).
        tb_alt = _round_up(pl.cdiv(batch, n + 1), 128)
        if tb_alt >= 128 and pl.cdiv(batch, tb_alt) % 2 == 0:
            tb = tb_alt
            n = pl.cdiv(batch, tb_alt)
    return tb, n


def _make_fused_mlp_kernel(num_layers):
    """Fused kernel over all Linear+ReLU layers, batch-in-lanes layout."""

    def kernel(x_ref, *refs):
        # refs layout: [w0, b0, w1, b1, ..., o_ref]; w_i=(out,in), b_i=(out,1).
        o_ref = refs[-1]
        # Layer 0: contract x's feature axis (dim 1) with W0's input axis
        # (dim 1):  (out0, in) x (tb, in) -> (out0, tb).  Batch lives in the
        # lane dimension from here on.
        w0 = refs[0][...]
        b0 = refs[1][...]
        h = lax.dot_general(
            w0, x_ref[...],
            dimension_numbers=(((1,), (1,)), ((), ())),
            preferred_element_type=jnp.float32,
        )
        h = jnp.maximum(h + b0, 0.0)                       # bias + ReLU (VPU)
        for i in range(1, num_layers):
            w = refs[2 * i][...]                           # (out_i, in_i)
            b = refs[2 * i + 1][...]                       # (out_i, 1)
            h = jnp.dot(w, h, preferred_element_type=jnp.float32)
            h = jnp.maximum(h + b, 0.0)
        # After the out_dim=1 head, h is a lane-dense (1, tb) row.
        o_ref[...] = h[None]                               # (1, 1, tb) block

    return kernel


def init_mlp_params(key, in_dim, caches, out_dim=1):
    """Deterministic init matching torch.nn.Linear shapes.

    Weights kept in PyTorch layout (out, in); biases stored as (out, 1)
    columns so they broadcast along lanes inside the kernel.
    """
    assert out_dim == 1, "out_dim must be 1"
    dims = [in_dim] + list(caches) + [out_dim]
    params = []
    for i in range(len(dims) - 1):
        key, kw, kb = jax.random.split(key, 3)
        fan_in, fan_out = dims[i], dims[i + 1]
        bound = 1.0 / jnp.sqrt(jnp.float32(fan_in))
        w = jax.random.uniform(kw, (fan_out, fan_in), jnp.float32, -bound, bound)
        b = jax.random.uniform(kb, (fan_out, 1), jnp.float32, -bound, bound)
        params.append((w, b))
    return params


def mlp_forward(params, x, *, tb=4096):
    """relu(...relu(relu(x@W0.T+b0)@W1.T+b1)...@Wlast.T+blast), squeezed.

    params: list of (w, b) with w=(out,in), b=(out,1); last layer has out==1.
    x:      (B, in_dim) float32
    """
    B, Din = x.shape
    num_layers = len(params)
    tb, n_blocks = _select_tile(B, tb)

    # Activations are tiled over the batch grid; weights/biases are pinned
    # (same block every step -> VMEM resident).
    inputs = [x]
    in_specs = [pl.BlockSpec((tb, Din), lambda i: (i, 0))]
    for (w, b) in params:
        dout, din = w.shape
        inputs += [w, b]
        in_specs += [
            pl.BlockSpec((dout, din), lambda i: (0, 0)),
            pl.BlockSpec((dout, 1), lambda i: (0, 0)),
        ]

    out = pl.pallas_call(
        _make_fused_mlp_kernel(num_layers),
        out_shape=jax.ShapeDtypeStruct((n_blocks, 1, tb), jnp.float32),
        grid=(n_blocks,),
        in_specs=in_specs,
        out_specs=pl.BlockSpec((1, 1, tb), lambda i: (i, 0, 0)),
        compiler_params=pltpu.CompilerParams(
            dimension_semantics=("parallel",),   # v7x: shard batch tiles over 2 TCs
        ),
    )(*inputs)

    # (n_blocks, 1, tb) -> (n_blocks*tb,) is a contiguous (bitcast) reshape;
    # drop the ragged tail, then squeeze (matches torch.squeeze for B == 1 too).
    return jnp.squeeze(out.reshape(-1)[:B])


def _reference_forward(params, x):
    """Pure-JAX reference (ReLU on every layer, then squeeze)."""
    h = x
    for w, b in params:
        h = jnp.maximum(h @ w.T + b.T, 0.0)
    return jnp.squeeze(h)


if __name__ == "__main__":
    key = jax.random.PRNGKey(0)

    in_dim = 16
    caches = [32, 16]
    out_dim = 1

    kx1, kx2, kp = jax.random.split(key, 3)
    params = init_mlp_params(kp, in_dim, caches, out_dim)

    # Case 1: tiny batch -> single block (block == full array dims).
    x_small = jax.random.normal(kx1, (8, in_dim), jnp.float32)
    out_small = mlp_forward(params, x_small)
    jax.block_until_ready(out_small)
    ref_small = _reference_forward(params, x_small)
    assert out_small.shape == (8,), out_small.shape
    assert jnp.allclose(out_small, ref_small, atol=1e-5, rtol=1e-5), "mismatch (small)"

    # Case 2: tiled grid with a ragged last block
    # (B=300 -> tb=256, grid=(2,), 44 valid rows in the final block).
    x_big = jax.random.normal(kx2, (300, in_dim), jnp.float32)
    out_big = mlp_forward(params, x_big)
    jax.block_until_ready(out_big)
    ref_big = _reference_forward(params, x_big)
    assert out_big.shape == (300,), out_big.shape
    assert jnp.allclose(out_big, ref_big, atol=1e-5, rtol=1e-5), "mismatch (tiled)"

    print("KERNEL_OK")
</pallas_src>

<mosaic_0001>
module attributes {stable_mosaic.version = 11 : i64} {
  func.func @kernel(%arg0: i32, %arg1: memref<8x16xf32, #tpu.memory_space<vmem>>, %arg2: memref<32x16xf32, #tpu.memory_space<vmem>>, %arg3: memref<32x1xf32, #tpu.memory_space<vmem>>, %arg4: memref<16x32xf32, #tpu.memory_space<vmem>>, %arg5: memref<16x1xf32, #tpu.memory_space<vmem>>, %arg6: memref<1x16xf32, #tpu.memory_space<vmem>>, %arg7: memref<1x1xf32, #tpu.memory_space<vmem>>, %arg8: memref<1x1x8xf32, #tpu.memory_space<vmem>>) attributes {dimension_semantics = [#tpu.dimension_semantics<parallel>], iteration_bounds = array<i64: 1>, scalar_prefetch = 0 : i64, scratch_operands = 0 : i64, tpu.core_type = #tpu.core_type<tc>, window_params = [{transform_indices = @transform_0, window_bounds = array<i64: 8, 16>}, {pipeline_mode = #tpu.pipeline_mode<synchronous>, transform_indices = @transform_1, window_bounds = array<i64: 32, 16>}, {pipeline_mode = #tpu.pipeline_mode<synchronous>, transform_indices = @transform_2, window_bounds = array<i64: 32, 1>}, {pipeline_mode = #tpu.pipeline_mode<synchronous>, transform_indices = @transform_3, window_bounds = array<i64: 16, 32>}, {pipeline_mode = #tpu.pipeline_mode<synchronous>, transform_indices = @transform_4, window_bounds = array<i64: 16, 1>}, {pipeline_mode = #tpu.pipeline_mode<synchronous>, transform_indices = @transform_5, window_bounds = array<i64: 1, 16>}, {pipeline_mode = #tpu.pipeline_mode<synchronous>, transform_indices = @transform_6, window_bounds = array<i64: 1, 1>}, {transform_indices = @transform_7, window_bounds = array<i64: 1, 1, 8>}]} {
    %c0 = arith.constant 0 : index
    %c0_0 = arith.constant 0 : index
    %0 = vector.load %arg2[%c0, %c0_0] : memref<32x16xf32, #tpu.memory_space<vmem>>, vector<32x16xf32>
    %c0_1 = arith.constant 0 : index
    %c0_2 = arith.constant 0 : index
    %1 = vector.load %arg3[%c0_1, %c0_2] : memref<32x1xf32, #tpu.memory_space<vmem>>, vector<32x1xf32>
    %c0_3 = arith.constant 0 : index
    %c0_4 = arith.constant 0 : index
    %2 = vector.load %arg1[%c0_3, %c0_4] : memref<8x16xf32, #tpu.memory_space<vmem>>, vector<8x16xf32>
    %cst = arith.constant dense<0.000000e+00> : vector<32x8xf32>
    %3 = tpu.matmul %0, %2, %cst {dimension_numbers = #tpu.dot_dimension_numbers<[1], [1], [0], [0], [0, 0, 1, 0], [], []>} : vector<32x16xf32>, vector<8x16xf32>, vector<32x8xf32> -> vector<32x8xf32>
    %4 = vector.broadcast %1 : vector<32x1xf32> to vector<32x8xf32>
    %5 = arith.addf %3, %4 : vector<32x8xf32>
    %cst_5 = arith.constant 0.000000e+00 : f32
    %6 = vector.broadcast %cst_5 : f32 to vector<32x8xf32>
    %7 = arith.maximumf %5, %6 : vector<32x8xf32>
    %c0_6 = arith.constant 0 : index
    %c0_7 = arith.constant 0 : index
    %8 = vector.load %arg4[%c0_6, %c0_7] : memref<16x32xf32, #tpu.memory_space<vmem>>, vector<16x32xf32>
    %c0_8 = arith.constant 0 : index
    %c0_9 = arith.constant 0 : index
    %9 = vector.load %arg5[%c0_8, %c0_9] : memref<16x1xf32, #tpu.memory_space<vmem>>, vector<16x1xf32>
    %cst_10 = arith.constant dense<0.000000e+00> : vector<16x8xf32>
    %10 = tpu.matmul %8, %7, %cst_10 {dimension_numbers = #tpu.dot_dimension_numbers<[1], [0], [0], [1], [0, 0, 1, 1], [], []>} : vector<16x32xf32>, vector<32x8xf32>, vector<16x8xf32> -> vector<16x8xf32>
    %11 = vector.broadcast %9 : vector<16x1xf32> to vector<16x8xf32>
    %12 = arith.addf %10, %11 : vector<16x8xf32>
    %cst_11 = arith.constant 0.000000e+00 : f32
    %13 = vector.broadcast %cst_11 : f32 to vector<16x8xf32>
    %14 = arith.maximumf %12, %13 : vector<16x8xf32>
    %c0_12 = arith.constant 0 : index
    %c0_13 = arith.constant 0 : index
    %15 = vector.load %arg6[%c0_12, %c0_13] : memref<1x16xf32, #tpu.memory_space<vmem>>, vector<1x16xf32>
    %c0_14 = arith.constant 0 : index
    %c0_15 = arith.constant 0 : index
    %16 = vector.load %arg7[%c0_14, %c0_15] : memref<1x1xf32, #tpu.memory_space<vmem>>, vector<1x1xf32>
    %cst_16 = arith.constant dense<0.000000e+00> : vector<1x8xf32>
    %17 = tpu.matmul %15, %14, %cst_16 {dimension_numbers = #tpu.dot_dimension_numbers<[1], [0], [0], [1], [0, 0, 1, 1], [], []>} : vector<1x16xf32>, vector<16x8xf32>, vector<1x8xf32> -> vector<1x8xf32>
    %18 = vector.broadcast %16 : vector<1x1xf32> to vector<1x8xf32>
    %19 = arith.addf %17, %18 : vector<1x8xf32>
    %cst_17 = arith.constant 0.000000e+00 : f32
    %20 = vector.broadcast %cst_17 : f32 to vector<1x8xf32>
    %21 = arith.maximumf %19, %20 : vector<1x8xf32>
    %22 = vector.shape_cast %21 : vector<1x8xf32> to vector<1x1x8xf32>
    %c0_18 = arith.constant 0 : index
    %c0_19 = arith.constant 0 : index
    %c0_20 = arith.constant 0 : index
    %23 = vector.load %arg8[%c0_18, %c0_19, %c0_20] : memref<1x1x8xf32, #tpu.memory_space<vmem>>, vector<1x1x8xf32>
    tpu.vector_store %arg8[%c0_18, %c0_19, %c0_20], %22 {strides = array<i32>} : memref<1x1x8xf32, #tpu.memory_space<vmem>>, vector<1x1x8xf32>,
    return
  }
  func.func @transform_0(%arg0: i32) -> (i32, i32) {
    %c0_i32 = arith.constant 0 : i32
    %c0_i32_0 = arith.constant 0 : i32
    return %arg0, %c0_i32 : i32, i32
  }
  func.func @transform_1(%arg0: i32) -> (i32, i32) {
    %c0_i32 = arith.constant 0 : i32
    %c0_i32_0 = arith.constant 0 : i32
    %c0_i32_1 = arith.constant 0 : i32
    return %c0_i32, %c0_i32_0 : i32, i32
  }
  func.func @transform_2(%arg0: i32) -> (i32, i32) {
    %c0_i32 = arith.constant 0 : i32
    %c0_i32_0 = arith.constant 0 : i32
    %c0_i32_1 = arith.constant 0 : i32
    return %c0_i32, %c0_i32_0 : i32, i32
  }
  func.func @transform_3(%arg0: i32) -> (i32, i32) {
    %c0_i32 = arith.constant 0 : i32
    %c0_i32_0 = arith.constant 0 : i32
    %c0_i32_1 = arith.constant 0 : i32
    return %c0_i32, %c0_i32_0 : i32, i32
  }
  func.func @transform_4(%arg0: i32) -> (i32, i32) {
    %c0_i32 = arith.constant 0 : i32
    %c0_i32_0 = arith.constant 0 : i32
    %c0_i32_1 = arith.constant 0 : i32
    return %c0_i32, %c0_i32_0 : i32, i32
  }
  func.func @transform_5(%arg0: i32) -> (i32, i32) {
    %c0_i32 = arith.constant 0 : i32
    %c0_i32_0 = arith.constant 0 : i32
    %c0_i32_1 = arith.constant 0 : i32
    return %c0_i32, %c0_i32_0 : i32, i32
  }
  func.func @transform_6(%arg0: i32) -> (i32, i32) {
    %c0_i32 = arith.constant 0 : i32
    %c0_i32_0 = arith.constant 0 : i32
    %c0_i32_1 = arith.constant 0 : i32
    return %c0_i32, %c0_i32_0 : i32, i32
  }
  func.func @transform_7(%arg0: i32) -> (i32, i32, i32) {
    %c0_i32 = arith.constant 0 : i32
    %c0_i32_0 = arith.constant 0 : i32
    %c0_i32_1 = arith.constant 0 : i32
    return %arg0, %c0_i32, %c0_i32_0 : i32, i32, i32
  }
}

</mosaic_0001>

<bundles_post_ra>
// kernel: tpu_custom_call.1
= control target key start
LH: loop header
LB: loop body
LE: loop exit
PB: predicated region body
PF: predicated region fallthrough
CT: control target
= control target key end

     0   :  { %s539_s0 = inlined_call_operand.vmem [shape: f32[8,16], index: 0, kind: input, shape index: {}]   ;;  %s540_s1 = inlined_call_operand.vmem [shape: f32[32,16], index: 1, kind: input, shape index: {}]   ;;  %s541_s2 = inlined_call_operand.vmem [shape: f32[32,1], index: 2, kind: input, shape index: {}]   ;;  %s542_s3 = inlined_call_operand.vmem [shape: f32[16,32], index: 3, kind: input, shape index: {}]   ;;  %s543_s4 = inlined_call_operand.vmem [shape: f32[16,1], index: 4, kind: input, shape index: {}]   ;;  %s544_s5 = inlined_call_operand.vmem [shape: f32[1,16], index: 5, kind: input, shape index: {}]   ;;  %s545_s6 = inlined_call_operand.<no memory space> [shape: f32[1,1], index: 6, kind: input, shape index: {}]   ;;  %s546_s7 = inlined_call_operand.hbm [shape: f32[1,1,8], index: 7, kind: output, shape index: {}]  }
   0x1   :  { %v12_v0 = vstv %s545_s6 }
   0x2   :  { %13 = vst [vmem:[#allocation2] sm:$0x1] %v12_v0 }
   0x3   :  { %v37_v1 = vld [vmem:[%s539_s0] sm:$0xff]  ;;  %vm58_vm0 = vcmask 130048   ;;  %v36_v3 = vld [vmem:[%s541_s2 + $0x18] sm:$0xff]  ;;  %v30_v4 = vld [vmem:[%s540_s1 + $0x8] sm:$0xff]  ;;  %v438_v5 = vmov 0  }
   0x4   :  { %v29_v2 = vld [vmem:[%s540_s1] sm:$0xff]  ;;  %384 = vmatprep.subr.msk.mxu0 %vm58_vm0, %v37_v1  ;;  %414 = vset.pattern.permute.xlu0 %v438_v5  ;;  %v34_v6 = vld [vmem:[%s541_s2 + $0x8] sm:$0xff]  ;;  %v31_v7 = vld [vmem:[%s540_s1 + $0x10] sm:$0xff] }
   0x5   :  { %386 = vmatprep.mubr.msk.f32.mxu0 %vm58_vm0, %v29_v2  ;;  %385 = vmatpush3.xpose.msk.msra.mxu0 %vm58_vm0, %v37_v1  ;;  %v35_v8 = vld [vmem:[%s541_s2 + $0x10] sm:$0xff] }
   0x6   :  { %55 = vperm.xlu0 %414, %v36_v3   ;;  %415 = vset.pattern.permute.xlu1 %v438_v5 }
   0x7   :  { %45 = vperm.xlu1 %415, %v34_v6  }
   0x8   :  { %14 = vsyncpa [#allocation4], 0  ;;  %387 = vmatmul.mubr.msk.f32.vlgmr.msra.gmra.mxu0 %vm58_vm0, %v30_v4  ;;  %v33_v9 = vld [vmem:[%s541_s2] sm:$0xff]  ;;  %v32_v10 = vld [vmem:[%s540_s1 + $0x18] sm:$0xff]  ;;  %vm177_vm1 = vcmask 261120   ;;  %v439_v32 = vmov 0.0   ;;  %v268_v42 = vlaneseq }
   0x9   :  { %389 = vmatprep.mubr.msk.f32.mxu0 %vm58_vm0, %v31_v7  ;;  %v166_v11 = vld [vmem:[%s543_s4 + $0x8] sm:$0xff]  ;;  %v165_v12 = vld [vmem:[%s543_s4] sm:$0xff]  ;;  %403 = vmatprep.subr.mxu0 %v439_v32  ;;  %vm440_vm2 = vmmov 0   ;;  %vm346_vm3 = vcmask 57344  }
   0xa   :  { %50 = vperm.xlu0 %414, %v35_v8   ;;  %v262_v13 = vld [vmem:[#allocation2] sm:$0x1]  ;;  %v164_v31 = vld [vmem:[%s542_s3 + $0x8] sm:$0xff]  ;;  %v269_v43 = vshrl.u32 %v268_v42, 7 }
   0xb   :  { %40 = vperm.xlu1 %415, %v33_v9   ;;  %v163_v14 = vld [vmem:[%s542_s3] sm:$0xff]  ;;  %s441_s3 = smov [#allocation3]  }
   0xc   :  { %390 = vmatmul.mubr.msk.f32.gmra.mxu0 %vm58_vm0, %v32_v10  ;;  %400 = vmatprep.mubr.msk.f32.mxu1 %vm177_vm1, %v163_v14  ;;  %v261_v41 = vld [vmem:[%s544_s5] sm:$0x1]  ;;  %v270_v44 = vsub.s32 0, %v269_v43  ;;  %s354_s26 = sshll.u32 %s441_s3, 4  ;;  %s355_s26 = int_to_ptr.vmem [resolvable:$true] %s354_s26 }
   0xd   :  { %407 = vmatprep.mubr.msk.f32.mxu0 %vm440_vm2, %v439_v32  ;;  %s416_s27 = scalar_lea.vmem %s355_s26, 16  ;;  %s420_s5 = scalar_lea.vmem %s355_s26, 32 }
   0xe   :  { %174 = vperm.xlu0 %414, %v166_v11   ;;  %p417_p0 = scmp.ne.s32.totalorder %s355_s26, %s416_s27  ;;  %p421_p1 = scmp.lt.s32.totalorder %s355_s26, %s355_s26 }
   0xf   :  { %169 = vperm.xlu1 %415, %v165_v12   ;;  %p422_p2 = scmp.lt.s32.totalorder %s420_s5, %s416_s27 }
  0x11   :  { %p423_p3 = por %p422_p2, %p421_p1 }
  0x12   :  { %265 = vperm.xlu0 %414, %v262_v13  }
  0x13   :  { %p424_p4 = pnand %p423_p3, %p417_p0 }
  0x81   :  { %v56_v15 = vpop.permute.xlu0 %55 }
  0x82   :  { %v46_v16 = vpop.permute.xlu1 %45 }
  0x85   :  { %v51_v20 = vpop.permute.xlu0 %50 }
  0x86   :  { %v41_v22 = vpop.permute.xlu1 %40 }
  0x89   :  { %v175_v33 = vpop.permute.xlu0 %174 }
  0x8a   :  { %v170_v36 = vpop.permute.xlu1 %169 }
  0x8d   :  { %v266_v45 = vpop.permute.xlu0 %265 }
  0x8e   :  { %v271_v46 = vrot.slane %v266_v45, %v270_v44 }
  0xc8   :  { %v388_v17 = vpop.f32.mrf.mxu0 }
  0xc9   :  { %v146_v24 = vadd.f32 %v388_v17, %v46_v16 }
  0xca   :  { %v140_v18 = vpop.f32.mrf.mxu0 }
  0xcb   :  { %v141_v27 = vadd.f32 %v140_v18, %v41_v22  ;;  %v160_v29 = vmax.f32 %v146_v24, 0.0 }
  0xcc   :  { %v391_v19 = vpop.f32.mrf.mxu0 }
  0xcd   :  { %v156_v21 = vadd.f32 %v391_v19, %v56_v15  ;;  %v159_v30 = vmax.f32 %v141_v27, 0.0 }
  0xce   :  { %v150_v23 = vpop.f32.mrf.mxu0 }
  0xcf   :  { %v162_v25 = vmax.f32 %v156_v21, 0.0  ;;  %v151_v26 = vadd.f32 %v150_v23, %v51_v20 }
  0xd1   :  { %v161_v28 = vmax.f32 %v151_v26, 0.0  ;;  %392 = vmatprep.subr.mxu1 %v162_v25 }
  0xd2   :  { %393 = vmatpush3.msra.mxu1 %v162_v25 }
  0xd3   :  { %394 = vmatprep.subr.mxu1 %v161_v28 }
  0xd4   :  { %395 = vmatpush3.msra.mxu1 %v161_v28 }
  0xd5   :  { %396 = vmatprep.subr.mxu1 %v160_v29 }
  0xd6   :  { %397 = vmatpush3.msra.mxu1 %v160_v29 }
  0xd7   :  { %398 = vmatprep.subr.mxu1 %v159_v30 }
  0xd8   :  { %399 = vmatpush3.msra.mxu1 %v159_v30 }
  0xd9   :  { %401 = vmatmul.mubr.msk.f32.vlgmr.msra.gmra.mxu1 %vm177_vm1, %v164_v31 }
 0x199   :  { %v402_v34 = vpop.f32.mrf.mxu1 }
 0x19a   :  { %v256_v35 = vadd.f32 %v402_v34, %v175_v33 }
 0x19b   :  { %v250_v37 = vpop.f32.mrf.mxu1 }
 0x19c   :  { %v260_v38 = vmax.f32 %v256_v35, 0.0  ;;  %v251_v39 = vadd.f32 %v250_v37, %v170_v36 }
 0x19e   :  { %v259_v40 = vmax.f32 %v251_v39, 0.0  ;;  %404 = vmatpush3.msra.mxu0 %v260_v38 }
 0x19f   :  { %405 = vmatprep.subr.mxu0 %v439_v32 }
 0x1a0   :  { %406 = vmatpush3.msra.mxu0 %v259_v40 }
 0x1a1   :  { %408 = vmatmul.mubr.msk.f32.vlgmr.msra.gmra.mxu0 %vm58_vm0, %v261_v41 }
 0x261   :  { %v341_v47 = vpop.f32.mrf.mxu0 }
 0x262   :  { %v342_v48 = vadd.f32 %v341_v47, %v271_v46 }
 0x263   :  { %v409_v49 = vpop.f32.mrf.mxu0 }
 0x264   :  { %v345_v50 = vmax.f32 %v342_v48, 0.0 }
 0x266   :  { %347 = vst.msk [vmem:[#allocation3] sm:$0x1] %vm346_vm3, %v345_v50 }
 0x267   :  { %427 = shalt.err (!%p424_p4)
}
 0x268   :  { %357 = dma.vmem_to_hbm [thread:$0]  %s355_s26, 16, %s546_s7, [#allocation4]  }
 0x269   :  { %436 = dma.done.wait [#allocation4], 16  }
 0x26a   :  { %437 = vsyncadd [#allocation4], 4294967280 }
 0x26b   :  { %361 = vsyncpa [#allocation4], 1 }

</bundles_post_ra>
